<compile_context>
chip_gen: v5e
topology: v5e:2x2
jax: 0.10.0
libtpu: 0.0.40
codegen_flags: <defaults>
</compile_context>

<pallas_src>
import math

import jax
import jax.numpy as jnp
from jax.experimental import pallas as pl
from jax.experimental.pallas import tpu as pltpu


def _pick_tile(dim, candidates):
    """Largest candidate tile that evenly divides `dim`, else the full dim."""
    for c in candidates:
        if dim >= c and dim % c == 0:
            return c
    return dim


# ---------------------------------------------------------------------------
# Tiled matmul + bias (QKV projection and output projection).
# bf16 operands straight from HBM, f32 accumulation on the MXU, f32 bias add.
# ---------------------------------------------------------------------------
def _linear_kernel(x_ref, w_ref, b_ref, o_ref):
    acc = jnp.dot(x_ref[...], w_ref[...], preferred_element_type=jnp.float32)
    o_ref[...] = (acc + b_ref[...]).astype(o_ref.dtype)


def _linear(x2d, w, b, out_dtype):
    """x2d: (M, K) bf16, w: (K, N) bf16, b: (1, N) f32 -> (M, N) out_dtype."""
    M, K = x2d.shape
    Kw, N = w.shape
    assert K == Kw
    # Bigger row tiles cut weight re-streaming (traffic ~ (M/tm)*K*N); with bf16 operands
    # a (2048, K) + (K, 1152) + (2048, 1152) working set stays far under 48 MiB on v7x too.
    tm = _pick_tile(M, (2048, 1024, 512, 256, 128))
    # tn candidates include divisors of 3*C for GPT-2-style widths (3*768 = 2304 -> 1152).
    tn = _pick_tile(N, (1536, 1152, 1024, 768, 512, 384, 256, 128))
    grid = (M // tm, N // tn)
    return pl.pallas_call(
        _linear_kernel,
        out_shape=jax.ShapeDtypeStruct((M, N), out_dtype),
        grid_spec=pltpu.PrefetchScalarGridSpec(
            num_scalar_prefetch=0,
            grid=grid,
            in_specs=[
                pl.BlockSpec((tm, K), lambda i, j: (i, 0)),
                # Weight/bias blocks are invariant in i, so they are only re-fetched when
                # the output-column tile changes.
                pl.BlockSpec((K, tn), lambda i, j: (0, j)),
                pl.BlockSpec((1, tn), lambda i, j: (0, j)),
            ],
            out_specs=pl.BlockSpec((tm, tn), lambda i, j: (i, j)),
        ),
        compiler_params=pltpu.CompilerParams(
            dimension_semantics=("parallel", "parallel"),
            vmem_limit_bytes=48 * 1024 * 1024,
        ),
        cost_estimate=pl.CostEstimate(
            flops=2 * M * K * N,
            transcendentals=0,
            # bf16 activations/weights/output (2 B) + f32 bias (4 B).
            bytes_accessed=2 * (M * K + K * N + M * N) + 4 * N,
        ),
    )(x2d, w, b)


# ---------------------------------------------------------------------------
# Flash-attention kernel: online softmax over KV tiles, heads batched on the MXU,
# causal DMA elision + diagonal-only masking, heads merged on the way out.
# ---------------------------------------------------------------------------
def _make_flash_kernel(n_head, tq, tk, hd):
    def kernel(q_ref, k_ref, v_ref, o_ref, m_sc, l_sc, acc_sc):
        qi = pl.program_id(1)
        ki = pl.program_id(2)
        q_start = qi * tq
        kv_start = ki * tk

        @pl.when(ki == 0)
        def _init():
            m_sc[...] = jnp.full_like(m_sc, -1e30)
            l_sc[...] = jnp.zeros_like(l_sc)
            acc_sc[...] = jnp.zeros_like(acc_sc)

        def step(masked):
            # q/k/v arrive as bf16 with the 1/sqrt(hd) scale already folded into the
            # QKV weights -> no per-step VPU scaling or casting before the MXU.
            q = q_ref[0]                                           # (H, tq, hd) bf16
            k = k_ref[0]                                           # (H, tk, hd) bf16
            # Batched over heads, contracting hd (no explicit K transpose).
            s = jax.lax.dot_general(
                q, k, (((2,), (2,)), ((0,), (0,))),
                preferred_element_type=jnp.float32)                # (H, tq, tk) f32
            if masked:
                # 2-D mask (broadcast over heads); only emitted on tiles that actually
                # intersect the diagonal.
                row = q_start + jax.lax.broadcasted_iota(jnp.int32, (tq, tk), 0)
                col = kv_start + jax.lax.broadcasted_iota(jnp.int32, (tq, tk), 1)
                s = jnp.where((row >= col)[None, :, :], s, -1e30)
            m_prev = m_sc[...]                                     # (H, tq, 1) f32
            m_new = jnp.maximum(m_prev, jnp.max(s, axis=-1, keepdims=True))
            alpha = jnp.exp(m_prev - m_new)
            p = jnp.exp(s - m_new)                                 # f32 (v5e-safe elementwise)
            l_sc[...] = alpha * l_sc[...] + jnp.sum(p, axis=-1, keepdims=True)
            pv = jax.lax.dot_general(
                p.astype(jnp.bfloat16), v_ref[0], (((2,), (1,)), ((0,), (0,))),
                preferred_element_type=jnp.float32)                # (H, tq, hd) f32
            acc_sc[...] = alpha * acc_sc[...] + pv
            m_sc[...] = m_new

        # Tiles fully below the diagonal: compute with no mask work at all.
        @pl.when(kv_start + (tk - 1) <= q_start)
        def _below_diag():
            step(masked=False)

        # Tiles intersecting the diagonal: masked step.  Fully-above-diagonal tiles do
        # nothing here, and their K/V DMA is elided by the clamped index_map.
        @pl.when(jnp.logical_and(kv_start <= q_start + (tq - 1),
                                 kv_start + (tk - 1) > q_start))
        def _diag():
            step(masked=True)

        @pl.when(ki == pl.num_programs(2) - 1)
        def _finalize():
            # Deferred normalization: one reciprocal of l and a scale of the (H, tq, hd)
            # accumulator.  Heads are merged here into a lane-dense (tq, C) output block,
            # so the wrapper does no head-merge transpose / reshape HBM round trip.
            inv_l = pl.reciprocal(l_sc[...], approx=True)          # (H, tq, 1)
            for h in range(n_head):
                o_ref[:, h * hd:(h + 1) * hd] = (
                    acc_sc[h] * inv_l[h]).astype(o_ref.dtype)

    return kernel


def _flash_attention(q, k, v):
    """q, k, v: (B, H, T, hd) bf16 -> (B*T, H*hd) bf16 with heads merged (lane-dense)."""
    B, H, T, hd = q.shape
    C = H * hd
    # tq == tk by construction (same candidate list + same T); tk can be bumped to 512 on
    # v6e (128 MiB VMEM) to halve per-step rescale/grid overhead.
    tq = _pick_tile(T, (256, 128))
    tk = _pick_tile(T, (256, 128))
    q_tiles = T // tq
    kv_tiles = T // tk

    def q_map(b, qi, ki):
        return (b, 0, qi, 0)

    def kv_map(b, qi, ki):
        # Clamp above-diagonal steps to the last causal KV block: the block index does not
        # change, so Pallas skips the DMA for fully-masked tiles (compute is skipped by the
        # pl.when guards in the kernel, so the stale block is never read).
        if tq == tk:
            last_causal = qi
        else:
            last_causal = (qi * tq + tq - 1) // tk
        return (b, 0, jnp.minimum(ki, last_causal), 0)

    def o_map(b, qi, ki):
        return (b * q_tiles + qi, 0)

    kernel = _make_flash_kernel(H, tq, tk, hd)
    # Honest cost estimate: ~half the T x T work under causality, K/V re-streamed only up to
    # the diagonal per q tile.
    kv_fetch_tiles = sum(min(kv_tiles, (qi * tq + tq - 1) // tk + 1) for qi in range(q_tiles))
    return pl.pallas_call(
        kernel,
        out_shape=jax.ShapeDtypeStruct((B * T, C), q.dtype),
        grid_spec=pltpu.PrefetchScalarGridSpec(
            num_scalar_prefetch=0,
            grid=(B, q_tiles, kv_tiles),          # KV (reduction) axis innermost
            in_specs=[
                pl.BlockSpec((1, H, tq, hd), q_map),
                pl.BlockSpec((1, H, tk, hd), kv_map),
                pl.BlockSpec((1, H, tk, hd), kv_map),
            ],
            out_specs=pl.BlockSpec((tq, C), o_map),
            scratch_shapes=[
                pltpu.VMEM((H, tq, 1), jnp.float32),    # running max  m
                pltpu.VMEM((H, tq, 1), jnp.float32),    # running sum  l
                pltpu.VMEM((H, tq, hd), jnp.float32),   # output accumulator
            ],
        ),
        compiler_params=pltpu.CompilerParams(
            # Note: on v7x (2 TensorCores) a contiguous split of the q axis is load-imbalanced
            # under causality; prefer sharding over B (even extent) for multi-core chips.
            dimension_semantics=("parallel", "parallel", "arbitrary"),
            vmem_limit_bytes=48 * 1024 * 1024,   # leaves headroom on v7x's 64 MiB VMEM
        ),
        cost_estimate=pl.CostEstimate(
            flops=2 * B * H * T * T * hd,                 # causal half of 4*B*H*T^2*hd
            transcendentals=B * H * T * T // 2,
            bytes_accessed=(2 * B * H * T * hd                          # Q (bf16)
                            + 2 * 2 * B * H * hd * tk * kv_fetch_tiles  # K+V re-streamed
                            + 2 * B * T * C),                           # merged output (bf16)
        ),
    )(q, k, v)


# ---------------------------------------------------------------------------
# Full forward pass (matches the PyTorch module's semantics).
# ---------------------------------------------------------------------------
def causal_self_attention(x, w_qkv, b_qkv, w_proj, b_proj, *, n_head):
    """x: (B, T, C) f32; weights (in, out); biases (1, out) -> (B, T, C) f32."""
    B, T, C = x.shape
    assert C % n_head == 0
    hd = C // n_head

    # Fold the 1/sqrt(hd) attention scale into the Q columns of the QKV projection so the
    # flash kernel does no per-KV-step Q scaling.
    scale = 1.0 / math.sqrt(hd)
    w_qkv = w_qkv.at[:, :C].multiply(scale)
    b_qkv = b_qkv.at[:, :C].multiply(scale)

    # Stream activations / weights as bf16; all accumulation stays f32 inside the kernels.
    x_bf = x.astype(jnp.bfloat16)
    w_qkv_bf = w_qkv.astype(jnp.bfloat16)
    w_proj_bf = w_proj.astype(jnp.bfloat16)

    # 1) QKV projection -> (B*T, 3C) bf16.
    qkv = _linear(x_bf.reshape(B * T, C), w_qkv_bf, b_qkv, jnp.bfloat16)

    # Head split = torch's split + view + transpose (wrapper-side layout plumbing, now on
    # bf16 = half the bytes of the previous f32 transposes).
    qkv = qkv.reshape(B, T, 3, n_head, hd)
    q = qkv[:, :, 0].transpose(0, 2, 1, 3)          # (B, H, T, hd)
    k = qkv[:, :, 1].transpose(0, 2, 1, 3)
    v = qkv[:, :, 2].transpose(0, 2, 1, 3)

    # 2) Causal flash attention; kernel writes heads already merged as (B*T, C) bf16.
    y2d = _flash_attention(q, k, v)

    # 3) Output projection back to f32.
    out = _linear(y2d, w_proj_bf, b_proj, x.dtype)  # (B*T, C)
    return out.reshape(B, T, C)


def reference(x, w_qkv, b_qkv, w_proj, b_proj, n_head):
    """Pure-JAX f32 reference matching torch F.scaled_dot_product_attention(is_causal)."""
    B, T, C = x.shape
    hd = C // n_head
    qkv = x @ w_qkv + b_qkv[0]
    q, k, v = jnp.split(qkv, 3, axis=-1)
    q = q.reshape(B, T, n_head, hd).transpose(0, 2, 1, 3)
    k = k.reshape(B, T, n_head, hd).transpose(0, 2, 1, 3)
    v = v.reshape(B, T, n_head, hd).transpose(0, 2, 1, 3)
    s = jnp.einsum('bhqd,bhkd->bhqk', q, k) / math.sqrt(hd)
    mask = jnp.tril(jnp.ones((T, T), dtype=bool))
    s = jnp.where(mask, s, -jnp.inf)
    p = jax.nn.softmax(s, axis=-1)
    y = jnp.einsum('bhqk,bhkd->bhqd', p, v)
    y = y.transpose(0, 2, 1, 3).reshape(B, T, C)
    return y @ w_proj + b_proj[0]


if __name__ == "__main__":
    # Small config consistent with the module: n_embd divisible by n_head, T <= block_size.
    B, T, C, n_head = 2, 8, 32, 4

    key = jax.random.PRNGKey(0)
    kx, kw1, kb1, kw2, kb2 = jax.random.split(key, 5)

    x = jax.random.normal(kx, (B, T, C), dtype=jnp.float32)

    # nn.Linear(n_embd, 3*n_embd) / nn.Linear(n_embd, n_embd); weights pre-transposed
    # as (in, out) for x @ W; biases kept 2-D for TPU VMEM.
    bound1 = 1.0 / math.sqrt(C)
    w_qkv = jax.random.uniform(kw1, (C, 3 * C), jnp.float32, -bound1, bound1)
    b_qkv = jax.random.uniform(kb1, (1, 3 * C), jnp.float32, -bound1, bound1)
    w_proj = jax.random.uniform(kw2, (C, C), jnp.float32, -bound1, bound1)
    b_proj = jax.random.uniform(kb2, (1, C), jnp.float32, -bound1, bound1)

    attn = jax.jit(causal_self_attention, static_argnames=("n_head",))
    out = jax.block_until_ready(attn(x, w_qkv, b_qkv, w_proj, b_proj, n_head=n_head))

    ref = reference(x, w_qkv, b_qkv, w_proj, b_proj, n_head)
    assert out.shape == (B, T, C)
    # bf16 HBM streaming + bf16 MXU operands (f32 accumulation) -> tolerance looser than
    # the pure-f32 reference.
    max_err = float(jnp.max(jnp.abs(out - ref)))
    assert max_err < 3e-2, f"mismatch vs reference (max abs err {max_err})"

    print("KERNEL_OK")
</pallas_src>

<mosaic_0001>
module attributes {stable_mosaic.version = 11 : i64} {
  func.func @_linear_kernel(%arg0: i32, %arg1: i32, %arg2: memref<16x32xbf16, #tpu.memory_space<vmem>>, %arg3: memref<32x96xbf16, #tpu.memory_space<vmem>>, %arg4: memref<1x96xf32, #tpu.memory_space<vmem>>, %arg5: memref<16x96xbf16, #tpu.memory_space<vmem>>) attributes {dimension_semantics = [#tpu.dimension_semantics<parallel>, #tpu.dimension_semantics<parallel>], iteration_bounds = array<i64: 1, 1>, scalar_prefetch = 0 : i64, scratch_operands = 0 : i64, tpu.core_type = #tpu.core_type<tc>, window_params = [{transform_indices = @transform_0, window_bounds = array<i64: 16, 32>}, {transform_indices = @transform_1, window_bounds = array<i64: 32, 96>}, {transform_indices = @transform_2, window_bounds = array<i64: 1, 96>}, {transform_indices = @transform_3, window_bounds = array<i64: 16, 96>}]} {
    %c0 = arith.constant 0 : index
    %c0_0 = arith.constant 0 : index
    %0 = vector.load %arg2[%c0, %c0_0] : memref<16x32xbf16, #tpu.memory_space<vmem>>, vector<16x32xbf16>
    %c0_1 = arith.constant 0 : index
    %c0_2 = arith.constant 0 : index
    %1 = vector.load %arg3[%c0_1, %c0_2] : memref<32x96xbf16, #tpu.memory_space<vmem>>, vector<32x96xbf16>
    %cst = arith.constant dense<0.000000e+00> : vector<16x96xf32>
    %2 = tpu.matmul %0, %1, %cst {dimension_numbers = #tpu.dot_dimension_numbers<[1], [0], [0], [1], [0, 0, 1, 1], [], []>} : vector<16x32xbf16>, vector<32x96xbf16>, vector<16x96xf32> -> vector<16x96xf32>
    %c0_3 = arith.constant 0 : index
    %c0_4 = arith.constant 0 : index
    %3 = vector.load %arg4[%c0_3, %c0_4] : memref<1x96xf32, #tpu.memory_space<vmem>>, vector<1x96xf32>
    %4 = vector.broadcast %3 : vector<1x96xf32> to vector<16x96xf32>
    %5 = arith.addf %2, %4 : vector<16x96xf32>
    %6 = arith.truncf %5 : vector<16x96xf32> to vector<16x96xbf16>
    %c0_5 = arith.constant 0 : index
    %c0_6 = arith.constant 0 : index
    %7 = vector.load %arg5[%c0_5, %c0_6] : memref<16x96xbf16, #tpu.memory_space<vmem>>, vector<16x96xbf16>
    tpu.vector_store %arg5[%c0_5, %c0_6], %6 {strides = array<i32>} : memref<16x96xbf16, #tpu.memory_space<vmem>>, vector<16x96xbf16>,
    return
  }
  func.func @transform_0(%arg0: i32, %arg1: i32) -> (i32, i32) {
    %c0_i32 = arith.constant 0 : i32
    %c0_i32_0 = arith.constant 0 : i32
    return %arg0, %c0_i32 : i32, i32
  }
  func.func @transform_1(%arg0: i32, %arg1: i32) -> (i32, i32) {
    %c0_i32 = arith.constant 0 : i32
    %c0_i32_0 = arith.constant 0 : i32
    return %c0_i32, %arg1 : i32, i32
  }
  func.func @transform_2(%arg0: i32, %arg1: i32) -> (i32, i32) {
    %c0_i32 = arith.constant 0 : i32
    %c0_i32_0 = arith.constant 0 : i32
    return %c0_i32, %arg1 : i32, i32
  }
  func.func @transform_3(%arg0: i32, %arg1: i32) -> (i32, i32) {
    %c0_i32 = arith.constant 0 : i32
    return %arg0, %arg1 : i32, i32
  }
}

module attributes {stable_mosaic.version = 11 : i64} {
  func.func @_linear_kernel(%arg0: i32, %arg1: i32, %arg2: memref<16x32xbf16, #tpu.memory_space<vmem>>, %arg3: memref<32x32xbf16, #tpu.memory_space<vmem>>, %arg4: memref<1x32xf32, #tpu.memory_space<vmem>>, %arg5: memref<16x32xf32, #tpu.memory_space<vmem>>) attributes {dimension_semantics = [#tpu.dimension_semantics<parallel>, #tpu.dimension_semantics<parallel>], iteration_bounds = array<i64: 1, 1>, scalar_prefetch = 0 : i64, scratch_operands = 0 : i64, tpu.core_type = #tpu.core_type<tc>, window_params = [{transform_indices = @transform_0, window_bounds = array<i64: 16, 32>}, {transform_indices = @transform_1, window_bounds = array<i64: 32, 32>}, {transform_indices = @transform_2, window_bounds = array<i64: 1, 32>}, {transform_indices = @transform_3, window_bounds = array<i64: 16, 32>}]} {
    %c0 = arith.constant 0 : index
    %c0_0 = arith.constant 0 : index
    %0 = vector.load %arg2[%c0, %c0_0] : memref<16x32xbf16, #tpu.memory_space<vmem>>, vector<16x32xbf16>
    %c0_1 = arith.constant 0 : index
    %c0_2 = arith.constant 0 : index
    %1 = vector.load %arg3[%c0_1, %c0_2] : memref<32x32xbf16, #tpu.memory_space<vmem>>, vector<32x32xbf16>
    %cst = arith.constant dense<0.000000e+00> : vector<16x32xf32>
    %2 = tpu.matmul %0, %1, %cst {dimension_numbers = #tpu.dot_dimension_numbers<[1], [0], [0], [1], [0, 0, 1, 1], [], []>} : vector<16x32xbf16>, vector<32x32xbf16>, vector<16x32xf32> -> vector<16x32xf32>
    %c0_3 = arith.constant 0 : index
    %c0_4 = arith.constant 0 : index
    %3 = vector.load %arg4[%c0_3, %c0_4] : memref<1x32xf32, #tpu.memory_space<vmem>>, vector<1x32xf32>
    %4 = vector.broadcast %3 : vector<1x32xf32> to vector<16x32xf32>
    %5 = arith.addf %2, %4 : vector<16x32xf32>
    %c0_5 = arith.constant 0 : index
    %c0_6 = arith.constant 0 : index
    %6 = vector.load %arg5[%c0_5, %c0_6] : memref<16x32xf32, #tpu.memory_space<vmem>>, vector<16x32xf32>
    tpu.vector_store %arg5[%c0_5, %c0_6], %5 {strides = array<i32>} : memref<16x32xf32, #tpu.memory_space<vmem>>, vector<16x32xf32>,
    return
  }
  func.func @transform_0(%arg0: i32, %arg1: i32) -> (i32, i32) {
    %c0_i32 = arith.constant 0 : i32
    %c0_i32_0 = arith.constant 0 : i32
    return %arg0, %c0_i32 : i32, i32
  }
  func.func @transform_1(%arg0: i32, %arg1: i32) -> (i32, i32) {
    %c0_i32 = arith.constant 0 : i32
    %c0_i32_0 = arith.constant 0 : i32
    return %c0_i32, %arg1 : i32, i32
  }
  func.func @transform_2(%arg0: i32, %arg1: i32) -> (i32, i32) {
    %c0_i32 = arith.constant 0 : i32
    %c0_i32_0 = arith.constant 0 : i32
    return %c0_i32, %arg1 : i32, i32
  }
  func.func @transform_3(%arg0: i32, %arg1: i32) -> (i32, i32) {
    %c0_i32 = arith.constant 0 : i32
    return %arg0, %arg1 : i32, i32
  }
}

module attributes {stable_mosaic.version = 11 : i64} {
  func.func @kernel(%arg0: i32, %arg1: i32, %arg2: i32, %arg3: memref<1x4x8x8xbf16, #tpu.memory_space<vmem>>, %arg4: memref<1x4x8x8xbf16, #tpu.memory_space<vmem>>, %arg5: memref<1x4x8x8xbf16, #tpu.memory_space<vmem>>, %arg6: memref<8x32xbf16, #tpu.memory_space<vmem>>, %arg7: memref<4x8x1xf32, #tpu.memory_space<vmem>>, %arg8: memref<4x8x1xf32, #tpu.memory_space<vmem>>, %arg9: memref<4x8x8xf32, #tpu.memory_space<vmem>>) attributes {dimension_semantics = [#tpu.dimension_semantics<parallel>, #tpu.dimension_semantics<parallel>, #tpu.dimension_semantics<arbitrary>], iteration_bounds = array<i64: 2, 1, 1>, scalar_prefetch = 0 : i64, scratch_operands = 3 : i64, tpu.core_type = #tpu.core_type<tc>, window_params = [{transform_indices = @transform_0, window_bounds = array<i64: 1, 4, 8, 8>}, {transform_indices = @transform_1, window_bounds = array<i64: 1, 4, 8, 8>}, {transform_indices = @transform_2, window_bounds = array<i64: 1, 4, 8, 8>}, {transform_indices = @transform_3, window_bounds = array<i64: 8, 32>}]} {
    %c8_i32 = arith.constant 8 : i32
    %0 = arith.muli %arg1, %c8_i32 : i32
    %c8_i32_0 = arith.constant 8 : i32
    %1 = arith.muli %arg2, %c8_i32_0 : i32
    %c0_i32 = arith.constant 0 : i32
    %2 = arith.cmpi eq, %arg2, %c0_i32 : i32
    %3 = arith.extui %2 : i1 to i32
    %c0_i32_1 = arith.constant 0 : i32
    %4 = arith.cmpi ne, %3, %c0_i32_1 : i32
    scf.if %4 {
      %cst = arith.constant -1.000000e+30 : f32
      %19 = vector.broadcast %cst : f32 to vector<4x8x1xf32>
      %c0 = arith.constant 0 : index
      %c0_8 = arith.constant 0 : index
      %c0_9 = arith.constant 0 : index
      %20 = vector.load %arg7[%c0, %c0_8, %c0_9] : memref<4x8x1xf32, #tpu.memory_space<vmem>>, vector<4x8x1xf32>
      tpu.vector_store %arg7[%c0, %c0_8, %c0_9], %19 {strides = array<i32>} : memref<4x8x1xf32, #tpu.memory_space<vmem>>, vector<4x8x1xf32>,
      %cst_10 = arith.constant 0.000000e+00 : f32
      %21 = vector.broadcast %cst_10 : f32 to vector<4x8x1xf32>
      %c0_11 = arith.constant 0 : index
      %c0_12 = arith.constant 0 : index
      %c0_13 = arith.constant 0 : index
      %22 = vector.load %arg8[%c0_11, %c0_12, %c0_13] : memref<4x8x1xf32, #tpu.memory_space<vmem>>, vector<4x8x1xf32>
      tpu.vector_store %arg8[%c0_11, %c0_12, %c0_13], %21 {strides = array<i32>} : memref<4x8x1xf32, #tpu.memory_space<vmem>>, vector<4x8x1xf32>,
      %cst_14 = arith.constant 0.000000e+00 : f32
      %23 = vector.broadcast %cst_14 : f32 to vector<4x8x8xf32>
      %c0_15 = arith.constant 0 : index
      %c0_16 = arith.constant 0 : index
      %c0_17 = arith.constant 0 : index
      %24 = vector.load %arg9[%c0_15, %c0_16, %c0_17] : memref<4x8x8xf32, #tpu.memory_space<vmem>>, vector<4x8x8xf32>
      tpu.vector_store %arg9[%c0_15, %c0_16, %c0_17], %23 {strides = array<i32>} : memref<4x8x8xf32, #tpu.memory_space<vmem>>, vector<4x8x8xf32>,
    } else {
    }
    %c7_i32 = arith.constant 7 : i32
    %5 = arith.addi %1, %c7_i32 : i32
    %6 = arith.cmpi sle, %5, %0 : i32
    %7 = arith.extui %6 : i1 to i32
    %c0_i32_2 = arith.constant 0 : i32
    %8 = arith.cmpi ne, %7, %c0_i32_2 : i32
    scf.if %8 {
      %c0 = arith.constant 0 : index
      %c0_8 = arith.constant 0 : index
      %c0_9 = arith.constant 0 : index
      %c0_10 = arith.constant 0 : index
      %19 = vector.load %arg3[%c0, %c0_8, %c0_9, %c0_10] : memref<1x4x8x8xbf16, #tpu.memory_space<vmem>>, vector<1x4x8x8xbf16>
      %20 = vector.shape_cast %19 : vector<1x4x8x8xbf16> to vector<4x8x8xbf16>
      %c0_11 = arith.constant 0 : index
      %c0_12 = arith.constant 0 : index
      %c0_13 = arith.constant 0 : index
      %c0_14 = arith.constant 0 : index
      %21 = vector.load %arg4[%c0_11, %c0_12, %c0_13, %c0_14] : memref<1x4x8x8xbf16, #tpu.memory_space<vmem>>, vector<1x4x8x8xbf16>
      %22 = vector.shape_cast %21 : vector<1x4x8x8xbf16> to vector<4x8x8xbf16>
      %cst = arith.constant dense<0.000000e+00> : vector<4x8x8xf32>
      %23 = tpu.matmul %20, %22, %cst {dimension_numbers = #tpu.dot_dimension_numbers<[2], [2], [1], [1], [0, 0, 0, 1, 1, 1], [0], [0]>} : vector<4x8x8xbf16>, vector<4x8x8xbf16>, vector<4x8x8xf32> -> vector<4x8x8xf32>
      %c0_15 = arith.constant 0 : index
      %c0_16 = arith.constant 0 : index
      %c0_17 = arith.constant 0 : index
      %24 = vector.load %arg7[%c0_15, %c0_16, %c0_17] : memref<4x8x1xf32, #tpu.memory_space<vmem>>, vector<4x8x1xf32>
      %cst_18 = arith.constant dense<0xFF800000> : vector<4x8xf32>
      %25 = vector.multi_reduction <maximumf>, %23, %cst_18 [2] : vector<4x8x8xf32> to vector<4x8xf32>
      %26 = vector.shape_cast %25 : vector<4x8xf32> to vector<4x8x1xf32>
      %27 = arith.maximumf %24, %26 : vector<4x8x1xf32>
      %28 = arith.subf %24, %27 : vector<4x8x1xf32>
      %29 = math.exp %28 : vector<4x8x1xf32>
      %30 = vector.broadcast %27 : vector<4x8x1xf32> to vector<4x8x8xf32>
      %31 = arith.subf %23, %30 : vector<4x8x8xf32>
      %32 = math.exp %31 : vector<4x8x8xf32>
      %c0_19 = arith.constant 0 : index
      %c0_20 = arith.constant 0 : index
      %c0_21 = arith.constant 0 : index
      %33 = vector.load %arg8[%c0_19, %c0_20, %c0_21] : memref<4x8x1xf32, #tpu.memory_space<vmem>>, vector<4x8x1xf32>
      %34 = arith.mulf %29, %33 : vector<4x8x1xf32>
      %cst_22 = arith.constant dense<0.000000e+00> : vector<4x8xf32>
      %35 = vector.multi_reduction <add>, %32, %cst_22 [2] : vector<4x8x8xf32> to vector<4x8xf32>
      %36 = vector.shape_cast %35 : vector<4x8xf32> to vector<4x8x1xf32>
      %37 = arith.addf %34, %36 : vector<4x8x1xf32>
      %c0_23 = arith.constant 0 : index
      %c0_24 = arith.constant 0 : index
      %c0_25 = arith.constant 0 : index
      %38 = vector.load %arg8[%c0_23, %c0_24, %c0_25] : memref<4x8x1xf32, #tpu.memory_space<vmem>>, vector<4x8x1xf32>
      tpu.vector_store %arg8[%c0_23, %c0_24, %c0_25], %37 {strides = array<i32>} : memref<4x8x1xf32, #tpu.memory_space<vmem>>, vector<4x8x1xf32>,
      %39 = arith.truncf %32 : vector<4x8x8xf32> to vector<4x8x8xbf16>
      %c0_26 = arith.constant 0 : index
      %c0_27 = arith.constant 0 : index
      %c0_28 = arith.constant 0 : index
      %c0_29 = arith.constant 0 : index
      %40 = vector.load %arg5[%c0_26, %c0_27, %c0_28, %c0_29] : memref<1x4x8x8xbf16, #tpu.memory_space<vmem>>, vector<1x4x8x8xbf16>
      %41 = vector.shape_cast %40 : vector<1x4x8x8xbf16> to vector<4x8x8xbf16>
      %cst_30 = arith.constant dense<0.000000e+00> : vector<4x8x8xf32>
      %42 = tpu.matmul %39, %41, %cst_30 {dimension_numbers = #tpu.dot_dimension_numbers<[2], [1], [1], [2], [0, 0, 0, 1, 1, 2], [0], [0]>} : vector<4x8x8xbf16>, vector<4x8x8xbf16>, vector<4x8x8xf32> -> vector<4x8x8xf32>
      %c0_31 = arith.constant 0 : index
      %c0_32 = arith.constant 0 : index
      %c0_33 = arith.constant 0 : index
      %43 = vector.load %arg9[%c0_31, %c0_32, %c0_33] : memref<4x8x8xf32, #tpu.memory_space<vmem>>, vector<4x8x8xf32>
      %44 = vector.broadcast %29 : vector<4x8x1xf32> to vector<4x8x8xf32>
      %45 = arith.mulf %44, %43 : vector<4x8x8xf32>
      %46 = arith.addf %45, %42 : vector<4x8x8xf32>
      %c0_34 = arith.constant 0 : index
      %c0_35 = arith.constant 0 : index
      %c0_36 = arith.constant 0 : index
      %47 = vector.load %arg9[%c0_34, %c0_35, %c0_36] : memref<4x8x8xf32, #tpu.memory_space<vmem>>, vector<4x8x8xf32>
      tpu.vector_store %arg9[%c0_34, %c0_35, %c0_36], %46 {strides = array<i32>} : memref<4x8x8xf32, #tpu.memory_space<vmem>>, vector<4x8x8xf32>,
      %c0_37 = arith.constant 0 : index
      %c0_38 = arith.constant 0 : index
      %c0_39 = arith.constant 0 : index
      %48 = vector.load %arg7[%c0_37, %c0_38, %c0_39] : memref<4x8x1xf32, #tpu.memory_space<vmem>>, vector<4x8x1xf32>
      tpu.vector_store %arg7[%c0_37, %c0_38, %c0_39], %27 {strides = array<i32>} : memref<4x8x1xf32, #tpu.memory_space<vmem>>, vector<4x8x1xf32>,
    } else {
    }
    %c7_i32_3 = arith.constant 7 : i32
    %9 = arith.addi %0, %c7_i32_3 : i32
    %10 = arith.cmpi sle, %1, %9 : i32
    %c7_i32_4 = arith.constant 7 : i32
    %11 = arith.addi %1, %c7_i32_4 : i32
    %12 = arith.cmpi sgt, %11, %0 : i32
    %13 = arith.andi %10, %12 : i1
    %14 = arith.extui %13 : i1 to i32
    %c0_i32_5 = arith.constant 0 : i32
    %15 = arith.cmpi ne, %14, %c0_i32_5 : i32
    scf.if %15 {
      %c0 = arith.constant 0 : index
      %c0_8 = arith.constant 0 : index
      %c0_9 = arith.constant 0 : index
      %c0_10 = arith.constant 0 : index
      %19 = vector.load %arg3[%c0, %c0_8, %c0_9, %c0_10] : memref<1x4x8x8xbf16, #tpu.memory_space<vmem>>, vector<1x4x8x8xbf16>
      %20 = vector.shape_cast %19 : vector<1x4x8x8xbf16> to vector<4x8x8xbf16>
      %c0_11 = arith.constant 0 : index
      %c0_12 = arith.constant 0 : index
      %c0_13 = arith.constant 0 : index
      %c0_14 = arith.constant 0 : index
      %21 = vector.load %arg4[%c0_11, %c0_12, %c0_13, %c0_14] : memref<1x4x8x8xbf16, #tpu.memory_space<vmem>>, vector<1x4x8x8xbf16>
      %22 = vector.shape_cast %21 : vector<1x4x8x8xbf16> to vector<4x8x8xbf16>
      %cst = arith.constant dense<0.000000e+00> : vector<4x8x8xf32>
      %23 = tpu.matmul %20, %22, %cst {dimension_numbers = #tpu.dot_dimension_numbers<[2], [2], [1], [1], [0, 0, 0, 1, 1, 1], [0], [0]>} : vector<4x8x8xbf16>, vector<4x8x8xbf16>, vector<4x8x8xf32> -> vector<4x8x8xf32>
      %24 = tpu.iota {dimensions = array<i32: 0>} : vector<8x8xi32>
      %25 = vector.broadcast %0 : i32 to vector<8x8xi32>
      %26 = arith.addi %25, %24 : vector<8x8xi32>
      %27 = tpu.iota {dimensions = array<i32: 1>} : vector<8x8xi32>
      %28 = vector.broadcast %1 : i32 to vector<8x8xi32>
      %29 = arith.addi %28, %27 : vector<8x8xi32>
      %30 = arith.cmpi sge, %26, %29 : vector<8x8xi32>
      %31 = vector.shape_cast %30 : vector<8x8xi1> to vector<1x8x8xi1>
      %cst_15 = arith.constant -1.000000e+30 : f32
      %32 = vector.shape_cast %31 : vector<1x8x8xi1> to vector<1x8x8xi1>
      %33 = vector.broadcast %32 : vector<1x8x8xi1> to vector<4x8x8xi1>
      %34 = vector.broadcast %cst_15 : f32 to vector<4x8x8xf32>
      %35 = arith.select %33, %23, %34 : vector<4x8x8xi1>, vector<4x8x8xf32>
      %c0_16 = arith.constant 0 : index
      %c0_17 = arith.constant 0 : index
      %c0_18 = arith.constant 0 : index
      %36 = vector.load %arg7[%c0_16, %c0_17, %c0_18] : memref<4x8x1xf32, #tpu.memory_space<vmem>>, vector<4x8x1xf32>
      %cst_19 = arith.constant dense<0xFF800000> : vector<4x8xf32>
      %37 = vector.multi_reduction <maximumf>, %35, %cst_19 [2] : vector<4x8x8xf32> to vector<4x8xf32>
      %38 = vector.shape_cast %37 : vector<4x8xf32> to vector<4x8x1xf32>
      %39 = arith.maximumf %36, %38 : vector<4x8x1xf32>
      %40 = arith.subf %36, %39 : vector<4x8x1xf32>
      %41 = math.exp %40 : vector<4x8x1xf32>
      %42 = vector.broadcast %39 : vector<4x8x1xf32> to vector<4x8x8xf32>
      %43 = arith.subf %35, %42 : vector<4x8x8xf32>
      %44 = math.exp %43 : vector<4x8x8xf32>
      %c0_20 = arith.constant 0 : index
      %c0_21 = arith.constant 0 : index
      %c0_22 = arith.constant 0 : index
      %45 = vector.load %arg8[%c0_20, %c0_21, %c0_22] : memref<4x8x1xf32, #tpu.memory_space<vmem>>, vector<4x8x1xf32>
      %46 = arith.mulf %41, %45 : vector<4x8x1xf32>
      %cst_23 = arith.constant dense<0.000000e+00> : vector<4x8xf32>
      %47 = vector.multi_reduction <add>, %44, %cst_23 [2] : vector<4x8x8xf32> to vector<4x8xf32>
      %48 = vector.shape_cast %47 : vector<4x8xf32> to vector<4x8x1xf32>
      %49 = arith.addf %46, %48 : vector<4x8x1xf32>
      %c0_24 = arith.constant 0 : index
      %c0_25 = arith.constant 0 : index
      %c0_26 = arith.constant 0 : index
      %50 = vector.load %arg8[%c0_24, %c0_25, %c0_26] : memref<4x8x1xf32, #tpu.memory_space<vmem>>, vector<4x8x1xf32>
      tpu.vector_store %arg8[%c0_24, %c0_25, %c0_26], %49 {strides = array<i32>} : memref<4x8x1xf32, #tpu.memory_space<vmem>>, vector<4x8x1xf32>,
      %51 = arith.truncf %44 : vector<4x8x8xf32> to vector<4x8x8xbf16>
      %c0_27 = arith.constant 0 : index
      %c0_28 = arith.constant 0 : index
      %c0_29 = arith.constant 0 : index
      %c0_30 = arith.constant 0 : index
      %52 = vector.load %arg5[%c0_27, %c0_28, %c0_29, %c0_30] : memref<1x4x8x8xbf16, #tpu.memory_space<vmem>>, vector<1x4x8x8xbf16>
      %53 = vector.shape_cast %52 : vector<1x4x8x8xbf16> to vector<4x8x8xbf16>
      %cst_31 = arith.constant dense<0.000000e+00> : vector<4x8x8xf32>
      %54 = tpu.matmul %51, %53, %cst_31 {dimension_numbers = #tpu.dot_dimension_numbers<[2], [1], [1], [2], [0, 0, 0, 1, 1, 2], [0], [0]>} : vector<4x8x8xbf16>, vector<4x8x8xbf16>, vector<4x8x8xf32> -> vector<4x8x8xf32>
      %c0_32 = arith.constant 0 : index
      %c0_33 = arith.constant 0 : index
      %c0_34 = arith.constant 0 : index
      %55 = vector.load %arg9[%c0_32, %c0_33, %c0_34] : memref<4x8x8xf32, #tpu.memory_space<vmem>>, vector<4x8x8xf32>
      %56 = vector.broadcast %41 : vector<4x8x1xf32> to vector<4x8x8xf32>
      %57 = arith.mulf %56, %55 : vector<4x8x8xf32>
      %58 = arith.addf %57, %54 : vector<4x8x8xf32>
      %c0_35 = arith.constant 0 : index
      %c0_36 = arith.constant 0 : index
      %c0_37 = arith.constant 0 : index
      %59 = vector.load %arg9[%c0_35, %c0_36, %c0_37] : memref<4x8x8xf32, #tpu.memory_space<vmem>>, vector<4x8x8xf32>
      tpu.vector_store %arg9[%c0_35, %c0_36, %c0_37], %58 {strides = array<i32>} : memref<4x8x8xf32, #tpu.memory_space<vmem>>, vector<4x8x8xf32>,
      %c0_38 = arith.constant 0 : index
      %c0_39 = arith.constant 0 : index
      %c0_40 = arith.constant 0 : index
      %60 = vector.load %arg7[%c0_38, %c0_39, %c0_40] : memref<4x8x1xf32, #tpu.memory_space<vmem>>, vector<4x8x1xf32>
      tpu.vector_store %arg7[%c0_38, %c0_39, %c0_40], %39 {strides = array<i32>} : memref<4x8x1xf32, #tpu.memory_space<vmem>>, vector<4x8x1xf32>,
    } else {
    }
    %c0_i32_6 = arith.constant 0 : i32
    %16 = arith.cmpi eq, %arg2, %c0_i32_6 : i32
    %17 = arith.extui %16 : i1 to i32
    %c0_i32_7 = arith.constant 0 : i32
    %18 = arith.cmpi ne, %17, %c0_i32_7 : i32
    scf.if %18 {
      %c0 = arith.constant 0 : index
      %c0_8 = arith.constant 0 : index
      %c0_9 = arith.constant 0 : index
      %19 = vector.load %arg8[%c0, %c0_8, %c0_9] : memref<4x8x1xf32, #tpu.memory_space<vmem>>, vector<4x8x1xf32>
      %20 = tpu.reciprocal %19 {approx = true} : vector<4x8x1xf32> -> vector<4x8x1xf32>
      %c0_10 = arith.constant 0 : index
      %c0_11 = arith.constant 0 : index
      %c0_12 = arith.constant 0 : index
      %21 = vector.load %arg9[%c0_10, %c0_11, %c0_12] : memref<4x8x8xf32, #tpu.memory_space<vmem>>, vector<1x8x8xf32>
      %22 = vector.shape_cast %21 : vector<1x8x8xf32> to vector<8x8xf32>
      %23 = vector.extract_strided_slice %20 {offsets = [0, 0, 0], sizes = [1, 8, 1], strides = [1, 1, 1]} : vector<4x8x1xf32> to vector<1x8x1xf32>
      %24 = vector.shape_cast %23 : vector<1x8x1xf32> to vector<8x1xf32>
      %25 = vector.broadcast %24 : vector<8x1xf32> to vector<8x8xf32>
      %26 = arith.mulf %22, %25 : vector<8x8xf32>
      %27 = arith.truncf %26 : vector<8x8xf32> to vector<8x8xbf16>
      %c0_13 = arith.constant 0 : index
      %c0_14 = arith.constant 0 : index
      %28 = vector.load %arg6[%c0_13, %c0_14] : memref<8x32xbf16, #tpu.memory_space<vmem>>, vector<8x8xbf16>
      tpu.vector_store %arg6[%c0_13, %c0_14], %27 {strides = array<i32>} : memref<8x32xbf16, #tpu.memory_space<vmem>>, vector<8x8xbf16>,
      %c1 = arith.constant 1 : index
      %c0_15 = arith.constant 0 : index
      %c0_16 = arith.constant 0 : index
      %29 = vector.load %arg9[%c1, %c0_15, %c0_16] : memref<4x8x8xf32, #tpu.memory_space<vmem>>, vector<1x8x8xf32>
      %30 = vector.shape_cast %29 : vector<1x8x8xf32> to vector<8x8xf32>
      %31 = vector.extract_strided_slice %20 {offsets = [1, 0, 0], sizes = [1, 8, 1], strides = [1, 1, 1]} : vector<4x8x1xf32> to vector<1x8x1xf32>
      %32 = vector.shape_cast %31 : vector<1x8x1xf32> to vector<8x1xf32>
      %33 = vector.broadcast %32 : vector<8x1xf32> to vector<8x8xf32>
      %34 = arith.mulf %30, %33 : vector<8x8xf32>
      %35 = arith.truncf %34 : vector<8x8xf32> to vector<8x8xbf16>
      %c0_17 = arith.constant 0 : index
      %c8 = arith.constant 8 : index
      %36 = vector.load %arg6[%c0_17, %c8] : memref<8x32xbf16, #tpu.memory_space<vmem>>, vector<8x8xbf16>
      tpu.vector_store %arg6[%c0_17, %c8], %35 {strides = array<i32>} : memref<8x32xbf16, #tpu.memory_space<vmem>>, vector<8x8xbf16>,
      %c2 = arith.constant 2 : index
      %c0_18 = arith.constant 0 : index
      %c0_19 = arith.constant 0 : index
      %37 = vector.load %arg9[%c2, %c0_18, %c0_19] : memref<4x8x8xf32, #tpu.memory_space<vmem>>, vector<1x8x8xf32>
      %38 = vector.shape_cast %37 : vector<1x8x8xf32> to vector<8x8xf32>
      %39 = vector.extract_strided_slice %20 {offsets = [2, 0, 0], sizes = [1, 8, 1], strides = [1, 1, 1]} : vector<4x8x1xf32> to vector<1x8x1xf32>
      %40 = vector.shape_cast %39 : vector<1x8x1xf32> to vector<8x1xf32>
      %41 = vector.broadcast %40 : vector<8x1xf32> to vector<8x8xf32>
      %42 = arith.mulf %38, %41 : vector<8x8xf32>
      %43 = arith.truncf %42 : vector<8x8xf32> to vector<8x8xbf16>
      %c0_20 = arith.constant 0 : index
      %c16 = arith.constant 16 : index
      %44 = vector.load %arg6[%c0_20, %c16] : memref<8x32xbf16, #tpu.memory_space<vmem>>, vector<8x8xbf16>
      tpu.vector_store %arg6[%c0_20, %c16], %43 {strides = array<i32>} : memref<8x32xbf16, #tpu.memory_space<vmem>>, vector<8x8xbf16>,
      %c3 = arith.constant 3 : index
      %c0_21 = arith.constant 0 : index
      %c0_22 = arith.constant 0 : index
      %45 = vector.load %arg9[%c3, %c0_21, %c0_22] : memref<4x8x8xf32, #tpu.memory_space<vmem>>, vector<1x8x8xf32>
      %46 = vector.shape_cast %45 : vector<1x8x8xf32> to vector<8x8xf32>
      %47 = vector.extract_strided_slice %20 {offsets = [3, 0, 0], sizes = [1, 8, 1], strides = [1, 1, 1]} : vector<4x8x1xf32> to vector<1x8x1xf32>
      %48 = vector.shape_cast %47 : vector<1x8x1xf32> to vector<8x1xf32>
      %49 = vector.broadcast %48 : vector<8x1xf32> to vector<8x8xf32>
      %50 = arith.mulf %46, %49 : vector<8x8xf32>
      %51 = arith.truncf %50 : vector<8x8xf32> to vector<8x8xbf16>
      %c0_23 = arith.constant 0 : index
      %c24 = arith.constant 24 : index
      %52 = vector.load %arg6[%c0_23, %c24] : memref<8x32xbf16, #tpu.memory_space<vmem>>, vector<8x8xbf16>
      tpu.vector_store %arg6[%c0_23, %c24], %51 {strides = array<i32>} : memref<8x32xbf16, #tpu.memory_space<vmem>>, vector<8x8xbf16>,
    } else {
    }
    return
  }
  func.func @transform_0(%arg0: i32, %arg1: i32, %arg2: i32) -> (i32, i32, i32, i32) {
    %c0_i32 = arith.constant 0 : i32
    %c0_i32_0 = arith.constant 0 : i32
    %c0_i32_1 = arith.constant 0 : i32
    return %arg0, %c0_i32, %arg1, %c0_i32_0 : i32, i32, i32, i32
  }
  func.func @transform_1(%arg0: i32, %arg1: i32, %arg2: i32) -> (i32, i32, i32, i32) {
    %0 = arith.minsi %arg2, %arg1 : i32
    %c0_i32 = arith.constant 0 : i32
    %c0_i32_0 = arith.constant 0 : i32
    %c0_i32_1 = arith.constant 0 : i32
    return %arg0, %c0_i32, %0, %c0_i32_0 : i32, i32, i32, i32
  }
  func.func @transform_2(%arg0: i32, %arg1: i32, %arg2: i32) -> (i32, i32, i32, i32) {
    %0 = arith.minsi %arg2, %arg1 : i32
    %c0_i32 = arith.constant 0 : i32
    %c0_i32_0 = arith.constant 0 : i32
    %c0_i32_1 = arith.constant 0 : i32
    return %arg0, %c0_i32, %0, %c0_i32_0 : i32, i32, i32, i32
  }
  func.func @transform_3(%arg0: i32, %arg1: i32, %arg2: i32) -> (i32, i32) {
    %c1_i32 = arith.constant 1 : i32
    %0 = arith.muli %arg0, %c1_i32 : i32
    %1 = arith.addi %0, %arg1 : i32
    %c0_i32 = arith.constant 0 : i32
    %c0_i32_0 = arith.constant 0 : i32
    return %1, %c0_i32 : i32, i32
  }
}

</mosaic_0001>

<bundles_post_ra>
// kernel: causal_self_attention.3
= control target key start
LH: loop header
LB: loop body
LE: loop exit
PB: predicated region body
PF: predicated region fallthrough
CT: control target
= control target key end

     0   :  { %vm42_vm0 = vcmask 261120   ;;  %vm62_vm1 = vcmask 781312   ;;  %s124_s1 = inlined_call_operand.vmem [shape: bf16[32,96], index: 1, kind: input, shape index: {}]   ;;  %s125_s2 = inlined_call_operand.vmem [shape: f32[1,96], index: 2, kind: input, shape index: {}]   ;;  %s126_s0 = inlined_call_operand.vmem [shape: bf16[16,32], index: 0, kind: input, shape index: {}]   ;;  %s127_s3 = inlined_call_operand.vmem [shape: bf16[16,96], index: 3, kind: output, shape index: {}]  }
   0x1   :  { %v84_v0 = vld [vmem:[%s124_s1 + $0x8] sm:$0xff]  ;;  %v83_v1 = vld [vmem:[%s124_s1] sm:$0xff] }
   0x2   :  { %52 = vmatpush.bf16.msra.mxu0 %v84_v0  ;;  %v82_v2 = vld [vmem:[%s126_s0] sm:$0xff] }
   0x3   :  { %v85_v3 = vld [vmem:[%s125_s2] ss:$0 sm:$0xff] }
   0x6   :  { %53 = vmatpush.bf16.msra.mxu0 %v83_v1 }
   0x9   :  { %81 = vmatmul.msk.bf16.vlgmr.msra.gmra.mxu0 %vm42_vm0, %v82_v2 }
  0x86   :  { %v55_v4 = vpop.f32.mrf.mxu0 }
  0x87   :  { %v56_v5 = vadd.f32 %v85_v3, %v55_v4 }
  0x89   :  { %v60_v6 = vpack.c.bf16 %v56_v5, %v56_v5 }
  0x8b   :  { %63 = vst.msk [vmem:[%s127_s3] sm:$0xf] %vm62_vm1, %v60_v6 }
  0x8e   :  { %v57_v7 = vpop.f32.mrf.mxu0 }
  0x8f   :  { %v58_v8 = vadd.f32 %v85_v3, %v57_v7 }
  0x91   :  { %v61_v9 = vpack.c.bf16 %v58_v8, %v58_v8 }
  0x93   :  { %64 = vst.msk [vmem:[%s127_s3 + $0x4] sm:$0xf] %vm62_vm1, %v61_v9 }

// kernel: causal_self_attention.5
= control target key start
LH: loop header
LB: loop body
LE: loop exit
PB: predicated region body
PF: predicated region fallthrough
CT: control target
= control target key end

     0   :  { %s165_s0 = inlined_call_operand.vmem [shape: bf16[16,32], index: 0, kind: input, shape index: {}]   ;;  %s166_s1 = inlined_call_operand.vmem [shape: bf16[32,32], index: 1, kind: input, shape index: {}]   ;;  %s167_s2 = inlined_call_operand.vmem [shape: f32[1,32], index: 2, kind: input, shape index: {}]   ;;  %s168_s3 = inlined_call_operand.hbm [shape: f32[16,32], index: 3, kind: output, shape index: {}]  }
   0x1   :  { %v96_v0 = vld [vmem:[%s166_s1 + $0x8] sm:$0xff] }
   0x2   :  { %8 = vsyncpa [#allocation3], 0  ;;  %53 = vmatpush.bf16.msra.mxu0 %v96_v0  ;;  %v95_v1 = vld [vmem:[%s166_s1] sm:$0xff]  ;;  %vm43_vm0 = vcmask 261120   ;;  %s127_s20 = smov [#allocation2]   ;;  %s69_s1 = sshll.u32 %s168_s3, 4  ;;  %s70_s1 = int_to_ptr.hbm [resolvable:$true] %s69_s1 }
   0x3   :  { %v94_v2 = vld [vmem:[%s165_s0] sm:$0xff]  ;;  %s67_s21 = sshll.u32 %s127_s20, 4  ;;  %s128_s0 = smov 128   ;;  %s68_s21 = int_to_ptr.vmem [resolvable:$true] %s67_s21 }
   0x4   :  { %v100_v3 = vld [vmem:[%s167_s2] ss:$0 sm:$0xff]  ;;  %s129_s24 = smov 8  }
   0x6   :  { %54 = vmatpush.bf16.msra.mxu0 %v95_v1 }
   0x9   :  { %93 = vmatmul.msk.bf16.vlgmr.msra.gmra.mxu0 %vm43_vm0, %v94_v2 }
  0x86   :  { %v56_v4 = vpop.f32.mrf.mxu0 }
  0x87   :  { %v57_v5 = vadd.f32 %v100_v3, %v56_v4 }
  0x89   :  { %61 = vst.msk [vmem:[#allocation2] sm:$0xff] %vm43_vm0, %v57_v5 }
  0x8e   :  { %v58_v6 = vpop.f32.mrf.mxu0 }
  0x8f   :  { %v59_v7 = vadd.f32 %v100_v3, %v58_v6 }
  0x91   :  { %62 = vst.msk [vmem:[#allocation2 + $0x8] sm:$0xff] %vm43_vm0, %v59_v7 }
  0x92   :  { %75 = dma.vmem_to_hbm [thread:$0]  %s68_s21, 256, %s70_s1, [#allocation3], %s128_s0, %s128_s0, %s129_s24  }
  0x93   :  { %125 = dma.done.wait [#allocation3], 256  }
  0x94   :  { %126 = vsyncadd [#allocation3], 4294967040 }
  0x95   :  { %80 = vsyncpa [#allocation3], 1 }

// kernel: causal_self_attention.4
= control target key start
LH: loop header
LB: loop body
LE: loop exit
PB: predicated region body
PF: predicated region fallthrough
CT: control target
= control target key end

     0   :  { %s1264_s12 = smov 0   ;;  %s1266_s13 = smov 0   ;;  %s1408_s0 = inlined_call_operand.vmem [shape: bf16[2,4,8,8], index: 0, kind: input, shape index: {}]   ;;  %s1409_s1 = inlined_call_operand.vmem [shape: bf16[2,4,8,8], index: 1, kind: input, shape index: {}]   ;;  %s1410_s2 = inlined_call_operand.vmem [shape: bf16[2,4,8,8], index: 2, kind: input, shape index: {}]   ;;  %s1411_s3 = inlined_call_operand.vmem [shape: bf16[16,32], index: 3, kind: output, shape index: {}]  }
   0x1   :  { %s1268_s14 = smov 0  }
   0x2 LB: > { %s32_s15 = sadd.s32 1, %s1232_s13  ;;  %p1128_p0 = scmp.ge.s32.totalorder %s1236_s14, 1  ;;  %s1236_s14 = sphi %s1268_s14, %s13_s14   ;;  %s1232_s13 = sphi %s1266_s13, %s1413_s13   ;;  %s1228_s12 = sphi %s1264_s12, %s1412_s12  }
   0x3   : > { %p34_p1 = scmp.ge.s32.totalorder %s32_s15, 2  ;;  %p209_p2 = scmp.lt.s32.totalorder %s1236_s14, 3 }
   0x5   : > { %s1415_s15 = smov (%p34_p1, %s32_s15), 0  ;;  %p210_p3 = pnand %p1128_p0, %p209_p2 }
   0x6   : > { %p256_p4 = scmp.lt.s32.totalorder (!%p210_p3), %s1228_s12, 1  ;;  %s1241_s26 = smov (!%p210_p3), 8  }
   0x7   : > { %213 = sbr.rel (%p210_p3) target bundleno = 772 (0x304), region = 32  ;;  %s1242_s27 = smov (!%p210_p3), 24  }
   0x8   : > { %s1243_s28 = smov (!%p210_p3), 16  }
   0xc   : > { %s1417_s12 = smov (!%p256_p4, %s1228_s12), 1  ;;  %vm310_vm0 = vcmask 64512   ;;  %vm301_vm1 = vcmask 7168   ;;  %v1238_v12 = vmov -1e+30   ;;  %v715_v13 = vlaneseq }
   0xd   : > { %s1285_s16 = sshll.u32 %s1417_s12, 4  ;;  %303 = vst.msk [vmem:[#allocation2 + $0x8] sm:$0xff] %vm301_vm1, %v1238_v12  ;;  %v1239_v32 = vmov 0   ;;  %v1240_v33 = vmov 0.0   ;;  %vm834_vm3 = vcmask 1043456   ;;  %s1135_s29 = sshll.u32 %s1417_s12, 2 }
   0xe   : > { %s273_s19 = scalar_lea.vmem %s1409_s1, %s1285_s16  ;;  %s263_s22 = scalar_lea.vmem %s1408_s0, %s1285_s16  ;;  %302 = vst.msk [vmem:[#allocation2] sm:$0xff] %vm301_vm1, %v1238_v12  ;;  %v716_v14 = vshrl.u32 %v715_v13, 7  ;;  %v720_v15 = vand.u32 127, %v715_v13  ;;  %1189 = vset.pattern.permute.xlu0 %v1239_v32  ;;  %1187 = vset.pattern.permute.xlu1 %v1239_v32  ;;  %vm967_vm4 = vcmask 60416   ;;  %vm982_vm5 = vcmask 126016  }
   0xf   : > { %v635_v0 = vld [vmem:[%s273_s19 + $0x4] sm:$0xf]  ;;  %v636_v1 = vld [vmem:[%s273_s19 + $0x8] sm:$0xf]  ;;  %v637_v4 = vld [vmem:[%s273_s19 + $0xc] sm:$0xf]  ;;  %1188 = vset.pattern.permute.xlu2 %v1239_v32  ;;  %s285_s25 = scalar_lea.vmem %s1410_s2, %s1285_s16  ;;  %s292_s5 = scalar_lea.vmem %s1411_s3, %s1135_s29 }
  0x10   : > { %v662_v2 = vsel %vm310_vm0, %v635_v0, 0  ;;  %v681_v3 = vsel %vm310_vm0, %v636_v1, 0  ;;  %v700_v5 = vsel %vm310_vm0, %v637_v4, 0  ;;  %v634_v6 = vld [vmem:[%s273_s19] sm:$0xf]  ;;  %304 = vst.msk [vmem:[#allocation2 + $0x10] sm:$0xff] %vm301_vm1, %v1238_v12  ;;  %vm723_vm2 = vcmp.ge.s32.totalorder %v716_v14, %v720_v15 }
  0x11   : > { %671 = vmatpush.bf16.xpose.msra.mxu1 %v662_v2  ;;  %690 = vmatpush.bf16.xpose.msra.mxu2 %v681_v3  ;;  %v643_v7 = vsel %vm310_vm0, %v634_v6, 0  ;;  %v631_v8 = vld [vmem:[%s263_s22 + $0x4] sm:$0xf]  ;;  %v632_v9 = vld [vmem:[%s263_s22 + $0x8] sm:$0xf]  ;;  %305 = vst.msk [vmem:[#allocation2 + $0x18] sm:$0xff] %vm301_vm1, %v1238_v12 }
  0x12   : > { %709 = vmatpush.bf16.xpose.msra.mxu3 %v700_v5  ;;  %652 = vmatpush.bf16.xpose.msra.mxu0 %v643_v7  ;;  %v633_v10 = vld [vmem:[%s263_s22 + $0xc] sm:$0xf]  ;;  %v630_v11 = vld [vmem:[%s263_s22] sm:$0xf]  ;;  %309 = vst.msk [vmem:[#allocation3 + $0x18] sm:$0xff] %vm301_vm1, %v1240_v33  ;;  %vm997_vm6 = vcmask 191616  }
  0x13   : > { %306 = vst.msk [vmem:[#allocation3] sm:$0xff] %vm301_vm1, %v1240_v33  ;;  %v830_v50 = vld [vmem:[%s285_s25 + $0xc] sm:$0xf]  ;;  %v827_v52 = vld [vmem:[%s285_s25] sm:$0xf]  ;;  %vm1012_vm7 = vcmask 257216  }
  0x14   : > { %307 = vst.msk [vmem:[#allocation3 + $0x8] sm:$0xff] %vm301_vm1, %v1240_v33  ;;  %v1332_v34 = vld [vmem:[#allocation2 + $0x8] sm:$0xff]  ;;  %v893_v51 = vsel %vm834_vm3, %v830_v50, 0  ;;  %v836_v53 = vsel %vm834_vm3, %v827_v52, 0  ;;  %v828_v54 = vld [vmem:[%s285_s25 + $0x4] sm:$0xf] }
  0x15   : > { %308 = vst.msk [vmem:[#allocation3 + $0x10] sm:$0xff] %vm301_vm1, %v1240_v33  ;;  %v1334_v36 = vld [vmem:[#allocation2] sm:$0xff]  ;;  %v855_v55 = vsel %vm834_vm3, %v828_v54, 0  ;;  %v829_v56 = vld [vmem:[%s285_s25 + $0x8] sm:$0xf] }
  0x16   : > { %311 = vst.msk [vmem:[#allocation4] sm:$0xff] %vm310_vm0, %v1240_v33  ;;  %v874_v57 = vsel %vm834_vm3, %v829_v56, 0 }
  0x17   : > { %312 = vst.msk [vmem:[#allocation4 + $0x8] sm:$0xff] %vm310_vm0, %v1240_v33  ;;  %v1347_v41 = vld [vmem:[#allocation2 + $0x10] sm:$0xff] }
  0x18   : > { %1145 = vmatmul.msk.bf16.vlgmr.msra.gmra.mxu1 %vm310_vm0, %v631_v8  ;;  %1146 = vmatmul.msk.bf16.vlgmr.msra.gmra.mxu2 %vm310_vm0, %v632_v9  ;;  %313 = vst.msk [vmem:[#allocation4 + $0x10] sm:$0xff] %vm310_vm0, %v1240_v33  ;;  %v733_v46 = vld [vmem:[#allocation2 + $0x18] sm:$0xff] }
  0x19   : > { %1147 = vmatmul.msk.bf16.vlgmr.msra.gmra.mxu3 %vm310_vm0, %v633_v10  ;;  %1144 = vmatmul.msk.bf16.vlgmr.msra.gmra.mxu0 %vm310_vm0, %v630_v11  ;;  %314 = vst.msk [vmem:[#allocation4 + $0x18] sm:$0xff] %vm310_vm0, %v1240_v33 }
  0x1a   : > { %902 = vmatpush.bf16.msrb.mxu3 %v893_v51  ;;  %845 = vmatpush.bf16.msrb.mxu0 %v836_v53 }
  0x1b   : > { %864 = vmatpush.bf16.msrb.mxu1 %v855_v55  ;;  %883 = vmatpush.bf16.msrb.mxu2 %v874_v57 }
  0x1c   : > { %v796_v33 = vld [vmem:[#allocation3 + $0x10] sm:$0xff] }
  0x1e   : > { %v909_v50 = vld [vmem:[#allocation4 + $0x8] sm:$0xff] }
  0x95   : > { %v673_v16 = vpop.f32.mrf.mxu1 }
  0x96   : > { %v1308_v17 = vsel %vm723_vm2, %v673_v16, -1e+30  ;;  %v654_v19 = vpop.f32.mrf.mxu0 }
  0x97   : > { %v737_v18 = vsel %vm310_vm0, %v1308_v17, -inf  ;;  %v1313_v20 = vsel %vm723_vm2, %v654_v19, -1e+30 }
  0x98   : > { %738 = vmax.xlane.f32.xlu1 %v737_v18  ;;  %v734_v21 = vsel %vm310_vm0, %v1313_v20, -inf }
  0x99   : > { %735 = vmax.xlane.f32.xlu2 %v734_v21 }
  0x9b   : > { %v692_v22 = vpop.f32.mrf.mxu2 }
  0x9c   : > { %v1318_v23 = vsel %vm723_vm2, %v692_v22, -1e+30  ;;  %v711_v24 = vpop.f32.mrf.mxu3 }
  0x9d   : > { %v740_v25 = vsel %vm310_vm0, %v1318_v23, -inf  ;;  %v675_v26 = vpop.f32.mrf.mxu1  ;;  %v729_v28 = vsel %vm723_vm2, %v711_v24, -1e+30  ;;  %v797_v24 = vld [vmem:[#allocation3 + $0x18] sm:$0xff] }
  0x9e   : > { %741 = vmax.xlane.f32.xlu0 %v740_v25  ;;  %v656_v27 = vpop.f32.mrf.mxu0  ;;  %v743_v30 = vsel %vm310_vm0, %v729_v28, -inf }
  0xa3   : > { %v694_v29 = vpop.f32.mrf.mxu2 }
  0xa4   : > { %v713_v31 = vpop.f32.mrf.mxu3  ;;  %v795_v29 = vld [vmem:[#allocation3 + $0x8] sm:$0xff] }
  0xa6   : > { %744 = vmax.xlane.f32.xlu0 %v743_v30 }
 0x10b   : > { %v739_v35 = vpop.xlane.xlu1 %738 }
 0x10c   : > { %v1337_v37 = vmax.f32 %v1332_v34, %v739_v35  ;;  %v736_v38 = vpop.xlane.xlu2 %735  ;;  %v794_v35 = vld [vmem:[#allocation3] sm:$0xff] }
 0x10d   : > { %v1345_v40 = vmax.f32 %v1334_v36, %v736_v38 }
 0x10e   : > { %v751_v39 = vsub.f32 %v1332_v34, %v1337_v37  ;;  %945 = vst.msk [vmem:[#allocation2 + $0x8] sm:$0xff] %vm301_vm1, %v1337_v37  ;;  %769 = vperm.xlu0 %1189, %v1337_v37  }
 0x10f   : > { %v750_v42 = vsub.f32 %v1334_v36, %v1345_v40  ;;  %944 = vst.msk [vmem:[#allocation2] sm:$0xff] %vm301_vm1, %v1345_v40 }
 0x111   : > { %v742_v43 = vpop.xlane.xlu0 %741 }
 0x112   : > { %v1354_v44 = vmax.f32 %v1347_v41, %v742_v43 }
 0x114   : > { %v752_v45 = vsub.f32 %v1347_v41, %v1354_v44  ;;  %946 = vst.msk [vmem:[#allocation2 + $0x10] sm:$0xff] %vm301_vm1, %v1354_v44  ;;  %774 = vperm.xlu1 %1187, %v1354_v44   ;;  %v911_v44 = vld [vmem:[#allocation4 + $0x18] sm:$0xff] }
 0x116   : > { %v758_v21 = vmul.f32 1.442695, %v752_v45 }
 0x119   : > { %v745_v47 = vpop.xlane.xlu0 %744 }
 0x11a   : > { %v749_v48 = vmax.f32 %v733_v46, %v745_v47 }
 0x11c   : > { %v753_v49 = vsub.f32 %v733_v46, %v749_v48  ;;  %947 = vst.msk [vmem:[#allocation2 + $0x18] sm:$0xff] %vm301_vm1, %v749_v48  ;;  %779 = vperm.xlu2 %1188, %v749_v48  }
 0x11e   : > { %v760_v12 = vmul.f32 1.442695, %v753_v49 }
 0x124   : > { %764 = vperm.xlu2 %1188, %v1345_v40  }
 0x176   : > { %v780_v58 = vpop.permute.xlu2 %779 }
 0x177   : > { %v785_v59 = vsub.f32 %v729_v28, %v780_v58  ;;  %v754_v28 = vmul.f32 1.442695, %v750_v42 }
 0x179   : > { %v792_v60 = vmul.f32 1.442695, %v785_v59 }
 0x17b   : > { %1190 = vpow2.f32 %v792_v60 }
 0x17e   : > { %v765_v61 = vpop.permute.xlu2 %764 }
 0x17f   : > { %v782_v62 = vsub.f32 %v1313_v20, %v765_v61  ;;  %v756_v20 = vmul.f32 1.442695, %v751_v39 }
 0x180   : > { %v770_v63 = vpop.permute.xlu0 %769 }
 0x181   : > { %v1191_v0 = vpop.eup %1190  ;;  %v786_v1 = vmul.f32 1.442695, %v782_v62  ;;  %v783_v2 = vsub.f32 %v1308_v17, %v770_v63 }
 0x182   : > { %v811_v3 = vsel %vm310_vm0, %v1191_v0, 0.0  ;;  %v826_v4 = vpack.c.bf16 %v1191_v0, %v1191_v0 }
 0x183   : > { %1192 = vpow2.f32 %v786_v1  ;;  %v788_v5 = vmul.f32 1.442695, %v783_v2  ;;  %812 = vadd.xlane.f32.xlu0 %v811_v3  ;;  %v910_v1 = vld [vmem:[#allocation4 + $0x10] sm:$0xff] }
 0x184   : > { %1151 = vmatmul.msk.bf16.vlgmr.msrb.gmra.mxu3 %vm310_vm0, %v826_v4 }
 0x185   : > { %1194 = vpow2.f32 %v788_v5 }
 0x186   : > { %v775_v6 = vpop.permute.xlu1 %774 }
 0x187   : > { %v784_v7 = vsub.f32 %v1318_v23, %v775_v6 }
 0x189   : > { %v1193_v8 = vpop.eup %1192  ;;  %v790_v9 = vmul.f32 1.442695, %v784_v7 }
 0x18a   : > { %v823_v10 = vpack.c.bf16 %v1193_v8, %v1193_v8  ;;  %v802_v18 = vsel %vm310_vm0, %v1193_v8, 0.0 }
 0x18b   : > { %v1195_v11 = vpop.eup %1194  ;;  %1196 = vpow2.f32 %v790_v9 }
 0x18c   : > { %1148 = vmatmul.msk.bf16.vlgmr.msrb.gmra.mxu0 %vm310_vm0, %v823_v10  ;;  %v805_v13 = vsel %vm310_vm0, %v1195_v11, 0.0  ;;  %v824_v14 = vpack.c.bf16 %v1195_v11, %v1195_v11  ;;  %1198 = vpow2.f32 %v760_v12 }
 0x18d   : > { %806 = vadd.xlane.f32.xlu1 %v805_v13  ;;  %1200 = vpow2.f32 %v756_v20 }
 0x18e   : > { %1149 = vmatmul.msk.bf16.vlgmr.msrb.gmra.mxu1 %vm310_vm0, %v824_v14  ;;  %1202 = vpow2.f32 %v758_v21 }
 0x18f   : > { %1204 = vpow2.f32 %v754_v28 }
 0x191   : > { %v1197_v15 = vpop.eup %1196 }
 0x192   : > { %v808_v16 = vsel %vm310_vm0, %v1197_v15, 0.0  ;;  %v825_v17 = vpack.c.bf16 %v1197_v15, %v1197_v15  ;;  %v1199_v19 = vpop.eup %1198 }
 0x193   : > { %809 = vadd.xlane.f32.xlu2 %v808_v16  ;;  %v1201_v22 = vpop.eup %1200  ;;  %v801_v25 = vmul.f32 %v1199_v19, %v797_v24 }
 0x194   : > { %1150 = vmatmul.msk.bf16.vlgmr.msrb.gmra.mxu2 %vm310_vm0, %v825_v17  ;;  %v1203_v23 = vpop.eup %1202  ;;  %v799_v30 = vmul.f32 %v1201_v22, %v795_v29 }
 0x195   : > { %803 = vadd.xlane.f32.xlu1 %v802_v18  ;;  %v1205_v34 = vpop.eup %1204  ;;  %v800_v37 = vmul.f32 %v1203_v23, %v796_v33  ;;  %v908_v18 = vld [vmem:[#allocation4] sm:$0xff] }
 0x196   : > { %v798_v43 = vmul.f32 %v1205_v34, %v794_v35 }
 0x197   : > { %929 = vperm.xlu0 %1189, %v1199_v19  }
 0x1ab   : > { %919 = vperm.xlu2 %1188, %v1201_v22  }
 0x1ae   : > { %924 = vperm.xlu1 %1187, %v1203_v23  }
 0x1f6   : > { %v813_v26 = vpop.xlane.xlu0 %812 }
 0x1f7   : > { %v817_v27 = vadd.f32 %v813_v26, %v801_v25 }
 0x1f9   : > { %822 = vst.msk [vmem:[#allocation3 + $0x18] sm:$0xff] %vm301_vm1, %v817_v27 }
 0x200   : > { %v807_v31 = vpop.xlane.xlu1 %806  ;;  %v954_v54 = vld [vmem:[#allocation3 + $0x18] sm:$0xff] }
 0x201   : > { %v815_v32 = vadd.f32 %v807_v31, %v799_v30 }
 0x203   : > { %820 = vst.msk [vmem:[#allocation3 + $0x8] sm:$0xff] %vm301_vm1, %v815_v32 }
 0x206   : > { %v810_v38 = vpop.xlane.xlu2 %809 }
 0x207   : > { %v816_v39 = vadd.f32 %v810_v38, %v800_v37  ;;  %v904_v41 = vpop.f32.mrf.mxu3 }
 0x208   : > { %v804_v45 = vpop.xlane.xlu1 %803 }
 0x209   : > { %821 = vst.msk [vmem:[#allocation3 + $0x10] sm:$0xff] %vm301_vm1, %v816_v39  ;;  %v814_v36 = vadd.f32 %v804_v45, %v798_v43  ;;  %v930_v40 = vpop.permute.xlu0 %929  ;;  %v847_v42 = vpop.f32.mrf.mxu0 }
 0x20a   : > { %v935_v46 = vmul.f32 %v930_v40, %v911_v44  ;;  %v952_v47 = vld [vmem:[#allocation3 + $0x8] sm:$0xff] }
 0x20b   : > { %819 = vst.msk [vmem:[#allocation3] sm:$0xff] %vm301_vm1, %v814_v36  ;;  %v866_v48 = vpop.f32.mrf.mxu1  ;;  %1206 = vrcp.f32 %v952_v47 }
 0x20c   : > { %v939_v49 = vadd.f32 %v935_v46, %v904_v41 }
 0x20e   : > { %943 = vst.msk [vmem:[#allocation4 + $0x18] sm:$0xff] %vm310_vm0, %v939_v49  ;;  %v920_v51 = vpop.permute.xlu2 %919 }
 0x20f   : > { %v933_v52 = vmul.f32 %v920_v51, %v909_v50  ;;  %v906_v53 = vpop.f32.mrf.mxu3 }
 0x210   : > { %v953_v55 = vld [vmem:[#allocation3 + $0x10] sm:$0xff] }
 0x211   : > { %v1207_v56 = vpop.eup %1206  ;;  %v937_v57 = vadd.f32 %v933_v52, %v866_v48  ;;  %v849_v58 = vpop.f32.mrf.mxu0  ;;  %1208 = vrcp.f32 %v953_v55 }
 0x212   : > { %973 = vperm.xlu2 %1188, %v1207_v56   ;;  %1210 = vrcp.f32 %v954_v54  ;;  %v951_v59 = vld [vmem:[#allocation3] sm:$0xff] }
 0x213   : > { %941 = vst.msk [vmem:[#allocation4 + $0x8] sm:$0xff] %vm310_vm0, %v937_v57  ;;  %v868_v60 = vpop.f32.mrf.mxu1  ;;  %1212 = vrcp.f32 %v951_v59 }
 0x215   : > { %v1000_v10 = vld [vmem:[#allocation4 + $0x18] sm:$0xff] }
 0x217   : > { %v1209_v61 = vpop.eup %1208  ;;  %v885_v62 = vpop.f32.mrf.mxu2 }
 0x218   : > { %v1211_v63 = vpop.eup %1210  ;;  %988 = vperm.xlu1 %1187, %v1209_v61  }
 0x219   : > { %v1213_v0 = vpop.eup %1212 }
 0x21a   : > { %1003 = vperm.xlu2 %1188, %v1211_v63   ;;  %962 = vperm.xlu0 %1189, %v1213_v0   ;;  %v970_v6 = vld [vmem:[#allocation4 + $0x8] sm:$0xff] }
 0x21f   : > { %v887_v2 = vpop.f32.mrf.mxu2 }
 0x220   : > { %v925_v3 = vpop.permute.xlu1 %924  ;;  %914 = vperm.xlu1 %1187, %v1205_v34  }
 0x221   : > { %v934_v4 = vmul.f32 %v925_v3, %v910_v1 }
 0x223   : > { %v938_v5 = vadd.f32 %v934_v4, %v885_v62 }
 0x225   : > { %942 = vst.msk [vmem:[#allocation4 + $0x10] sm:$0xff] %vm310_vm0, %v938_v5 }
 0x22c   : > { %v985_v14 = vld [vmem:[#allocation4 + $0x10] sm:$0xff] }
 0x26c   : > { %v974_v7 = vpop.permute.xlu2 %973 }
 0x26d   : > { %v976_v8 = vmul.f32 %v974_v7, %v970_v6 }
 0x26f   : > { %v977_v9 = vpack.c.bf16 %v976_v8, %v976_v8 }
 0x271   : > { %979 = vrot.lane.b32.xlu2 %v977_v9, %s1241_s26 }
 0x274   : > { %v1004_v11 = vpop.permute.xlu2 %1003 }
 0x275   : > { %v1006_v12 = vmul.f32 %v1004_v11, %v1000_v10 }
 0x277   : > { %v1007_v13 = vpack.c.bf16 %v1006_v12, %v1006_v12 }
 0x279   : > { %1009 = vrot.lane.b32.xlu0 %v1007_v13, %s1242_s27 }
 0x28a   : > { %v989_v15 = vpop.permute.xlu1 %988 }
 0x28b   : > { %v991_v16 = vmul.f32 %v989_v15, %v985_v14 }
 0x28c   : > { %v963_v22 = vpop.permute.xlu0 %962 }
 0x28d   : > { %v992_v17 = vpack.c.bf16 %v991_v16, %v991_v16 }
 0x28f   : > { %994 = vrot.lane.b32.xlu1 %v992_v17, %s1243_s28 }
 0x292   : > { %v915_v19 = vpop.permute.xlu1 %914 }
 0x293   : > { %v932_v20 = vmul.f32 %v915_v19, %v908_v18 }
 0x295   : > { %v936_v21 = vadd.f32 %v932_v20, %v847_v42 }
 0x297   : > { %940 = vst.msk [vmem:[#allocation4] sm:$0xff] %vm310_vm0, %v936_v21 }
 0x29e   : > { %v959_v23 = vld [vmem:[#allocation4] sm:$0xff] }
 0x29f   : > { %v965_v24 = vmul.f32 %v963_v22, %v959_v23 }
 0x2a1   : > { %v966_v25 = vpack.c.bf16 %v965_v24, %v965_v24 }
 0x2a3   : > { %968 = vst.msk [vmem:[%s292_s5] sm:$0xf] %vm967_vm4, %v966_v25 }
 0x2cb   : > { %v980_v26 = vpop.permute.xlu2 %979 }
 0x2cc   : > { %983 = vst.msk [vmem:[%s292_s5] sm:$0xf] %vm982_vm5, %v980_v26 }
 0x2eb   : > { %v1010_v28 = vpop.permute.xlu0 %1009 }
 0x301   : > { %v995_v27 = vpop.permute.xlu1 %994 }
 0x302   : > { %998 = vst.msk [vmem:[%s292_s5] sm:$0xf] %vm997_vm6, %v995_v27 }
 0x303   : > { %1013 = vst.msk [vmem:[%s292_s5] sm:$0xf] %vm1012_vm7, %v1010_v28 }
 0x304 PF: > { %s13_s14 = sadd.s32 1, %s1236_s14   ;;  %s1412_s12 = smov %s1232_s13 }
 0x305   : > { %p10_p5 = scmp.ge.s32.totalorder %s13_s14, 4   ;;  %s1413_s13 = smov %s1415_s15 }
 0x307   :  { %12 = sbr.rel (!%p10_p5) target bundleno = 2 (0x2), region = 87 }

</bundles_post_ra>
